<compile_context>
chip_gen: v5e
topology: v5e:2x2
jax: 0.10.0
libtpu: 0.0.40
codegen_flags: <defaults>
</compile_context>

<pallas_src>
import jax
import jax.numpy as jnp
from jax.experimental import pallas as pl
from jax.experimental.pallas import tpu as pltpu


def _round_up(a, m):
    return (a + m - 1) // m * m


def _mlp_kernel(x_ref, w1_ref, b1_ref, w2_ref, b2_ref, out_ref):
    # Layer 1 (Linear) on the MXU; f32 accumulation regardless of input dtype.
    h = jnp.dot(x_ref[...], w1_ref[...], preferred_element_type=jnp.float32)
    # Bias + ReLU on the VPU in f32 (v5e has no bf16 VPU/EUP).
    h = jnp.maximum(h + b1_ref[...], 0.0)
    # Layer 2 (output width 1): VPU multiply + XLU lane reduction instead of a
    # >99%-padded MXU matmul.  Reducing away the lane axis yields a lane-dense
    # (tile_b,) vector, so the sigmoid (EUP) and the store run on dense vregs.
    z = jnp.sum(h * w2_ref[...], axis=-1)            # (tile_b,)
    z = z + b2_ref[0, 0]                             # scalar bias from SMEM
    out_ref[0, 0, :] = jax.nn.sigmoid(z).astype(out_ref.dtype)


def single_layer_binary_classifier(x, w1, b1, w2, b2, *, block_b=32768):
    """Forward pass. x:[B,In], w1:[In,H], b1:[1,H], w2:[1,H], b2:[1,1] -> [B,1] f32."""
    B, In = x.shape
    In2, H = w1.shape
    assert In == In2, "w1 must be [input_size, hidden_size]"
    assert w2.shape == (1, H), "w2 must be [1, hidden_size] (binary classifier head)"
    assert b1.shape == (1, H) and b2.shape == (1, 1)

    x_item = jnp.dtype(x.dtype).itemsize

    # --- batch-tile selection --------------------------------------------------
    # VMEM cost per x row is lane-padded to 128 columns; keep the double-buffered
    # working set comfortably under v7x's 64 MiB physical VMEM.
    x_row_vmem = _round_up(In, 128) * x_item          # padded bytes per x row in VMEM
    out_row_vmem = 32                                 # (1,1,t) block: 8-sublane pad * 4 B
    vmem_budget = 44 * 1024 * 1024
    max_tile = max(128, (vmem_budget // (2 * (x_row_vmem + out_row_vmem))) // 128 * 128)

    eff_block = min(block_b, max_tile)
    target = eff_block
    if B >= 4 * 512:
        # Keep >= 4 batch blocks for large batches so the "parallel" grid axis
        # has blocks to shard across both v7x TensorCores.
        target = min(target, -(-B // 4))
    if target >= B:
        tile_b = B                                    # single full-extent block (always legal)
    else:
        tile_b = max(128, _round_up(target, 128))     # 128-row multiple (covers bf16
        if tile_b >= B:                               # 16-row sublane packing too)
            tile_b = B

    n_blocks = pl.cdiv(B, tile_b)
    # NOTE: no jnp.pad of x — the ragged last block is handled by Pallas bounds
    # masking; garbage rows only feed garbage output rows, which are sliced off.

    # --- explicit scoped-VMEM limit (v5e's default is only 16 MiB) --------------
    x_buf = _round_up(tile_b, 16) * x_row_vmem
    out_buf = 8 * _round_up(tile_b, 128) * 4
    w_buf = (_round_up(In, 8) * _round_up(H, 128) * jnp.dtype(w1.dtype).itemsize
             + 2 * 8 * _round_up(H, 128) * 4)
    vmem_need = 2 * (x_buf + out_buf + w_buf) + (2 << 20)
    vmem_limit = int(min(64 << 20, max(vmem_need, 32 << 20)))

    out = pl.pallas_call(
        _mlp_kernel,
        out_shape=jax.ShapeDtypeStruct((n_blocks, 1, tile_b), jnp.float32),
        grid=(n_blocks,),
        in_specs=[
            pl.BlockSpec((tile_b, In), lambda i: (i, 0)),       # x tile (pipelined)
            pl.BlockSpec((In, H), lambda i: (0, 0)),            # w1 (resident)
            pl.BlockSpec((1, H), lambda i: (0, 0)),             # b1 (resident)
            pl.BlockSpec((1, H), lambda i: (0, 0)),             # w2 row (resident)
            pl.BlockSpec(memory_space=pltpu.MemorySpace.SMEM),  # b2 scalar
        ],
        out_specs=pl.BlockSpec((1, 1, tile_b), lambda i: (i, 0, 0)),  # lane-dense row
        compiler_params=pltpu.CompilerParams(
            dimension_semantics=("parallel",),    # shard batch tiles across TCs (v7x)
            vmem_limit_bytes=vmem_limit,
        ),
    )(x, w1, b1, w2, b2)

    # (n_blocks, 1, tile_b) row blocks -> flat -> drop masked tail -> [B, 1]
    return out.reshape(n_blocks * tile_b)[:B].reshape(B, 1)


def _xavier_uniform(key, fan_in, fan_out, shape):
    # Matches torch.nn.init.xavier_uniform_ (gain=1): U(-a, a), a = sqrt(6/(fan_in+fan_out))
    bound = (6.0 / (fan_in + fan_out)) ** 0.5
    return jax.random.uniform(key, shape, jnp.float32, -bound, bound)


if __name__ == "__main__":
    # Small shapes consistent with the module: batch=8, input=32, hidden=32, output=1
    batch, input_size, hidden_size, output_size = 8, 32, 32, 1

    key = jax.random.PRNGKey(0)
    kx, k1, k2, kb = jax.random.split(key, 4)

    x = jax.random.normal(kx, (batch, input_size), jnp.float32)
    w1 = _xavier_uniform(k1, input_size, hidden_size, (input_size, hidden_size))    # [In,H]
    b1 = jnp.zeros((1, hidden_size), jnp.float32)                                   # init.zeros_
    w2 = _xavier_uniform(k2, hidden_size, output_size, (output_size, hidden_size))  # [1,H]
    b2 = jnp.zeros((1, 1), jnp.float32)

    def ref_fn(xr, w1r, b1r, w2r, b2r):
        h = jnp.maximum(xr @ w1r + b1r, 0.0)
        return jax.nn.sigmoid(h @ w2r.T + b2r)

    # 1) Tiny f32 batch -> single full-extent block.
    y = single_layer_binary_classifier(x, w1, b1, w2, b2)
    jax.block_until_ready(y)
    assert y.shape == (batch, output_size)
    assert jnp.allclose(y, ref_fn(x, w1, b1, w2, b2), atol=1e-5, rtol=1e-5)

    # 2) Larger, non-multiple batch with the default block_b: exercises the
    #    multi-block grid, the >=4-block rule and the masked ragged tail (no pad).
    big_batch = 4100
    xb = jax.random.normal(kb, (big_batch, input_size), jnp.float32)
    yb = single_layer_binary_classifier(xb, w1, b1, w2, b2)
    jax.block_until_ready(yb)
    assert yb.shape == (big_batch, output_size)
    assert jnp.allclose(yb, ref_fn(xb, w1, b1, w2, b2), atol=1e-5, rtol=1e-5)

    # 3) bf16 x / w1 (recommended high-throughput path): MXU bf16 operands,
    #    f32 accumulation and f32 post-matmul math.
    ybf = single_layer_binary_classifier(
        xb.astype(jnp.bfloat16), w1.astype(jnp.bfloat16), b1, w2, b2)
    jax.block_until_ready(ybf)
    assert ybf.shape == (big_batch, output_size)
    assert jnp.allclose(ybf, ref_fn(xb, w1, b1, w2, b2), atol=2e-2, rtol=2e-2)

    print("KERNEL_OK")
</pallas_src>

<mosaic_0001>
module attributes {stable_mosaic.version = 11 : i64} {
  func.func @_mlp_kernel(%arg0: i32, %arg1: memref<8x32xf32, #tpu.memory_space<vmem>>, %arg2: memref<32x32xf32, #tpu.memory_space<vmem>>, %arg3: memref<1x32xf32, #tpu.memory_space<vmem>>, %arg4: memref<1x32xf32, #tpu.memory_space<vmem>>, %arg5: memref<1x1xf32, #tpu.memory_space<smem>>, %arg6: memref<1x1x8xf32, #tpu.memory_space<vmem>>) attributes {dimension_semantics = [#tpu.dimension_semantics<parallel>], iteration_bounds = array<i64: 1>, scalar_prefetch = 0 : i64, scratch_operands = 0 : i64, tpu.core_type = #tpu.core_type<tc>, window_params = [{transform_indices = @transform_0, window_bounds = array<i64: 8, 32>}, {pipeline_mode = #tpu.pipeline_mode<synchronous>, transform_indices = @transform_1, window_bounds = array<i64: 32, 32>}, {pipeline_mode = #tpu.pipeline_mode<synchronous>, transform_indices = @transform_2, window_bounds = array<i64: 1, 32>}, {pipeline_mode = #tpu.pipeline_mode<synchronous>, transform_indices = @transform_3, window_bounds = array<i64: 1, 32>}, {transform_indices = @transform_4, window_bounds = array<i64: 1, 1>}, {transform_indices = @transform_5, window_bounds = array<i64: 1, 1, 8>}]} {
    %c0 = arith.constant 0 : index
    %c0_0 = arith.constant 0 : index
    %0 = vector.load %arg1[%c0, %c0_0] : memref<8x32xf32, #tpu.memory_space<vmem>>, vector<8x32xf32>
    %c0_1 = arith.constant 0 : index
    %c0_2 = arith.constant 0 : index
    %1 = vector.load %arg2[%c0_1, %c0_2] : memref<32x32xf32, #tpu.memory_space<vmem>>, vector<32x32xf32>
    %cst = arith.constant dense<0.000000e+00> : vector<8x32xf32>
    %2 = tpu.matmul %0, %1, %cst {dimension_numbers = #tpu.dot_dimension_numbers<[1], [0], [0], [1], [0, 0, 1, 1], [], []>} : vector<8x32xf32>, vector<32x32xf32>, vector<8x32xf32> -> vector<8x32xf32>
    %c0_3 = arith.constant 0 : index
    %c0_4 = arith.constant 0 : index
    %3 = vector.load %arg3[%c0_3, %c0_4] : memref<1x32xf32, #tpu.memory_space<vmem>>, vector<1x32xf32>
    %4 = vector.broadcast %3 : vector<1x32xf32> to vector<8x32xf32>
    %5 = arith.addf %2, %4 : vector<8x32xf32>
    %cst_5 = arith.constant 0.000000e+00 : f32
    %6 = vector.broadcast %cst_5 : f32 to vector<8x32xf32>
    %7 = arith.maximumf %5, %6 : vector<8x32xf32>
    %c0_6 = arith.constant 0 : index
    %c0_7 = arith.constant 0 : index
    %8 = vector.load %arg4[%c0_6, %c0_7] : memref<1x32xf32, #tpu.memory_space<vmem>>, vector<1x32xf32>
    %9 = vector.broadcast %8 : vector<1x32xf32> to vector<8x32xf32>
    %10 = arith.mulf %7, %9 : vector<8x32xf32>
    %cst_8 = arith.constant dense<0.000000e+00> : vector<8xf32>
    %11 = vector.multi_reduction <add>, %10, %cst_8 [1] : vector<8x32xf32> to vector<8xf32>
    %c0_9 = arith.constant 0 : index
    %c0_10 = arith.constant 0 : index
    %12 = memref.load %arg5[%c0_9, %c0_10] : memref<1x1xf32, #tpu.memory_space<smem>>
    %13 = vector.broadcast %12 : f32 to vector<8xf32>
    %14 = arith.addf %11, %13 : vector<8xf32>
    %15 = arith.negf %14 : vector<8xf32>
    %16 = math.exp %15 : vector<8xf32>
    %cst_11 = arith.constant 1.000000e+00 : f32
    %17 = vector.broadcast %cst_11 : f32 to vector<8xf32>
    %18 = arith.addf %17, %16 : vector<8xf32>
    %19 = arith.divf %17, %18 : vector<8xf32>
    %c0_12 = arith.constant 0 : index
    %c0_13 = arith.constant 0 : index
    %c0_14 = arith.constant 0 : index
    %20 = vector.load %arg6[%c0_12, %c0_13, %c0_14] : memref<1x1x8xf32, #tpu.memory_space<vmem>>, vector<1x1x8xf32>
    %21 = vector.shape_cast %20 : vector<1x1x8xf32> to vector<8xf32>
    %22 = vector.shape_cast %19 : vector<8xf32> to vector<1x1x8xf32>
    tpu.vector_store %arg6[%c0_12, %c0_13, %c0_14], %22 {strides = array<i32>} : memref<1x1x8xf32, #tpu.memory_space<vmem>>, vector<1x1x8xf32>,
    return
  }
  func.func @transform_0(%arg0: i32) -> (i32, i32) {
    %c0_i32 = arith.constant 0 : i32
    %c0_i32_0 = arith.constant 0 : i32
    return %arg0, %c0_i32 : i32, i32
  }
  func.func @transform_1(%arg0: i32) -> (i32, i32) {
    %c0_i32 = arith.constant 0 : i32
    %c0_i32_0 = arith.constant 0 : i32
    %c0_i32_1 = arith.constant 0 : i32
    return %c0_i32, %c0_i32_0 : i32, i32
  }
  func.func @transform_2(%arg0: i32) -> (i32, i32) {
    %c0_i32 = arith.constant 0 : i32
    %c0_i32_0 = arith.constant 0 : i32
    %c0_i32_1 = arith.constant 0 : i32
    return %c0_i32, %c0_i32_0 : i32, i32
  }
  func.func @transform_3(%arg0: i32) -> (i32, i32) {
    %c0_i32 = arith.constant 0 : i32
    %c0_i32_0 = arith.constant 0 : i32
    %c0_i32_1 = arith.constant 0 : i32
    return %c0_i32, %c0_i32_0 : i32, i32
  }
  func.func @transform_4(%arg0: i32) -> (i32, i32) {
    %c0_i32 = arith.constant 0 : i32
    %c0_i32_0 = arith.constant 0 : i32
    %c0_i32_1 = arith.constant 0 : i32
    return %c0_i32, %c0_i32_0 : i32, i32
  }
  func.func @transform_5(%arg0: i32) -> (i32, i32, i32) {
    %c0_i32 = arith.constant 0 : i32
    %c0_i32_0 = arith.constant 0 : i32
    %c0_i32_1 = arith.constant 0 : i32
    return %arg0, %c0_i32, %c0_i32_0 : i32, i32, i32
  }
}

</mosaic_0001>

<bundles_post_ra>
// kernel: tpu_custom_call.1
= control target key start
LH: loop header
LB: loop body
LE: loop exit
PB: predicated region body
PF: predicated region fallthrough
CT: control target
= control target key end

     0   :  { %11 = vsyncpa [#allocation4], 0  ;;  %s285_s0 = inlined_call_operand.hbm [shape: f32[8,32], index: 0, kind: input, shape index: {}]   ;;  %s286_s1 = inlined_call_operand.hbm [shape: f32[32,32], index: 1, kind: input, shape index: {}]   ;;  %s287_s2 = inlined_call_operand.vmem [shape: f32[1,32], index: 2, kind: input, shape index: {}]   ;;  %s288_s3 = inlined_call_operand.vmem [shape: f32[1,32], index: 3, kind: input, shape index: {}]   ;;  %s289_s4 = inlined_call_operand.<no memory space> [shape: f32[1,1], index: 4, kind: input, shape index: {}]   ;;  %s290_s5 = inlined_call_operand.hbm [shape: f32[1,1,8], index: 5, kind: output, shape index: {}]  }
   0x1   :  { %12 = vsyncpa [#allocation7], 0 }
   0x2   :  { %13 = vsyncpa [#allocation5], 0  ;;  %s19_s20 = sshll.u32 %s285_s0, 4  ;;  %s232_s21 = smov [#allocation3]   ;;  %s20_s20 = int_to_ptr.hbm [resolvable:$true] %s19_s20 }
   0x3   :  { %s21_s22 = sshll.u32 %s232_s21, 4  ;;  %s29_s25 = sshll.u32 %s286_s1, 4  ;;  %s22_s22 = int_to_ptr.vmem [resolvable:$true] %s21_s22  ;;  %s30_s25 = int_to_ptr.hbm [resolvable:$true] %s29_s25 }
   0x4   :  { %24 = dma.hbm_to_vmem [thread:$0]  %s20_s20, 128, %s22_s22, [#allocation4]  }
   0x5   :  { %s233_s26 = smov [#allocation6]   ;;  %s234_s28 = smov 128  }
   0x6   :  { %s31_s27 = sshll.u32 %s233_s26, 4  ;;  %s235_s29 = smov 8   ;;  %s32_s27 = int_to_ptr.vmem [resolvable:$true] %s31_s27 }
   0x7   :  { %37 = dma.hbm_to_vmem [thread:$0]  %s30_s25, 512, %s32_s27, [#allocation7], %s234_s28, %s234_s28, %s235_s29  }
   0x8   :  { %226 = dma.done.wait [#allocation4], 128  }
   0x9   :  { %227 = vsyncadd [#allocation4], 4294967168 }
   0xa   :  { %228 = dma.done.wait [#allocation7], 512  }
   0xb   :  { %229 = vsyncadd [#allocation7], 4294966784  ;;  %v56_v0 = vld [vmem:[#allocation6 + $0x18] sm:$0xff]  ;;  %v55_v1 = vld [vmem:[#allocation6 + $0x10] sm:$0xff]  ;;  %vm61_vm0 = vcmask 261120   ;;  %v95_v12 = vstv %s289_s4  ;;  %v117_v21 = vlaneseq  ;;  %s130_s10 = sshll.u32 %s290_s5, 4  ;;  %s131_s10 = int_to_ptr.hbm [resolvable:$true] %s130_s10 }
   0xc   :  { %77 = vmatpush.msra.mxu0 %v56_v0  ;;  %v54_v2 = vld [vmem:[#allocation6 + $0x8] sm:$0xff]  ;;  %v53_v3 = vld [vmem:[#allocation6] sm:$0xff]  ;;  %v52_v4 = vld [vmem:[#allocation3] sm:$0xff]  ;;  %vm121_vm5 = vcmask 57344  }
   0xd   :  { %v148_v5 = vld [vmem:[%s287_s2] ss:$0 sm:$0xff]  ;;  %v118_v26 = vand.u32 127, %v117_v21  ;;  %s236_s2 = smov [#allocation8]  }
   0xe   :  { %78 = vmatpush.msra.mxu0 %v55_v1  ;;  %v149_v8 = vld [vmem:[%s288_s3] ss:$0 sm:$0xff]  ;;  %s128_s3 = sshll.u32 %s236_s2, 4  ;;  %s129_s3 = int_to_ptr.vmem [resolvable:$true] %s128_s3 }
  0x10   :  { %79 = vmatpush.msra.mxu0 %v54_v2 }
  0x12   :  { %80 = vmatpush.msra.mxu0 %v53_v3 }
  0x13   :  { %141 = vmatmul.msk.f32.vlgmr.msra.gmra.mxu0 %vm61_vm0, %v52_v4 }
  0x90   :  { %v82_v6 = vpop.f32.mrf.mxu0 }
  0x91   :  { %v83_v7 = vadd.f32 %v148_v5, %v82_v6 }
  0x93   :  { %v85_v9 = vmax.f32 %v83_v7, 0.0 }
  0x95   :  { %v90_v10 = vmul.f32 %v149_v8, %v85_v9 }
  0x97   :  { %v91_v11 = vsel %vm61_vm0, %v90_v10, 0.0 }
  0x98   :  { %92 = vadd.xlane.f32.xlu0 %v91_v11 }
 0x10b   :  { %v93_v13 = vpop.xlane.xlu0 %92 }
 0x10c   :  { %v96_v14 = vadd.f32 %v95_v12, %v93_v13 }
 0x10e   :  { %v142_v15 = vmul.f32 -1.442695, %v96_v14 }
 0x110   :  { %150 = vpow2.f32 %v142_v15 }
 0x116   :  { %v151_v16 = vpop.eup %150 }
 0x117   :  { %v100_v17 = vadd.f32 1.0, %v151_v16 }
 0x119   :  { %152 = vrcp.f32 %v100_v17  ;;  %v112_v22 = vand.u32 2147483648, %v100_v17  ;;  %v110_v24 = vand.u32 2147483647, %v100_v17  ;;  %vm106_vm2 = vweird.f32 %v100_v17 }
 0x11b   :  { %v113_v27 = vor.u32 1.1754944e-38, %v112_v22  ;;  %vm111_vm4 = vcmp.eq.f32.partialorder %v110_v24, 8.507059e+37 }
 0x11f   :  { %v153_v18 = vpop.eup %152 }
 0x120   :  { %v102_v19 = vmul.f32 %v153_v18, %v100_v17  ;;  %vm107_vm1 = vweird.f32 %v153_v18 }
 0x121   :  { %vm108_vm3 = vmor %vm106_vm2, %vm107_vm1 }
 0x122   :  { %v103_v20 = vsub.f32 1.0, %v102_v19 }
 0x124   :  { %v104_v23 = vmul.f32 %v153_v18, %v103_v20 }
 0x126   :  { %v105_v25 = vadd.f32 %v153_v18, %v104_v23 }
 0x128   :  { %v109_v28 = vsel %vm108_vm3, %v153_v18, %v105_v25 }
 0x129   :  { %v114_v29 = vsel %vm111_vm4, %v113_v27, %v109_v28 }
 0x12a   :  { %v119_v30 = vperm.slane %v114_v29, %v118_v26 }
 0x12c   :  { %122 = vst.msk [vmem:[#allocation8] sm:$0x1] %vm121_vm5, %v119_v30 }
 0x12d   :  { %133 = dma.vmem_to_hbm [thread:$0]  %s129_s3, 16, %s131_s10, [#allocation5]  }
 0x12e   :  { %230 = dma.done.wait [#allocation5], 16  }
 0x12f   :  { %231 = vsyncadd [#allocation5], 4294967280 }
 0x130   :  { %138 = vsyncpa [#allocation4], 1 }
 0x131   :  { %139 = vsyncpa [#allocation7], 1 }
 0x132   :  { %140 = vsyncpa [#allocation5], 1 }

</bundles_post_ra>
